<compile_context>
chip_gen: v7x
topology: tpu7x:2x2x1
jax: 0.10.0
libtpu: 0.0.40
codegen_flags: <defaults>
</compile_context>

<pallas_src>
import jax
import jax.numpy as jnp
from jax.experimental import pallas as pl
from jax.experimental.pallas import tpu as pltpu

INPUT_SIZE = 80
HIDDEN = 256
OUT = 3
NEG_SLOPE = 0.2


def _round_up(n, m):
    return ((n + m - 1) // m) * m


def _leaky_relu(x):
    # valid because 0 < NEG_SLOPE < 1
    return jnp.maximum(x, NEG_SLOPE * x)


def classifier_kernel(x_ref, w1_ref, b1_ref, w2_ref, b2_ref, o_ref):
    # Layer 1: (tm, 80)bf16 @ (80, 256)bf16 -> f32 accum, bias + LeakyReLU in f32.
    h = jnp.dot(x_ref[...], w1_ref[...], preferred_element_type=jnp.float32)
    h = _leaky_relu(h + b1_ref[...])
    # Layer 2: (tm, 256)bf16 @ (256, 3)bf16 -> f32 accum, bias + LeakyReLU in f32.
    y = jnp.dot(h.astype(jnp.bfloat16), w2_ref[...],
                preferred_element_type=jnp.float32)
    y = _leaky_relu(y + b2_ref[...])
    o_ref[...] = y.astype(o_ref.dtype)


def classifier_forward(x, w1, b1, w2, b2, *, tile_m=512):
    """x: (B, 80) f32; w1: (80, 256); b1: (1, 256); w2: (256, 3); b2: (1, 3)."""
    B, D = x.shape
    assert D == INPUT_SIZE

    # Pick a sublane-aligned tile; pad the batch so the grid divides evenly.
    tile_m = max(8, min(tile_m, _round_up(B, 8)))
    b_pad = _round_up(B, tile_m)
    if b_pad != B:
        x = jnp.pad(x, ((0, b_pad - B), (0, 0)))

    # bf16 streaming inputs / weights; biases stay f32 (added post-accumulation).
    x_bf = x.astype(jnp.bfloat16)
    w1_bf = w1.astype(jnp.bfloat16)
    w2_bf = w2.astype(jnp.bfloat16)
    b1_f = b1.astype(jnp.float32)
    b2_f = b2.astype(jnp.float32)

    grid = (b_pad // tile_m,)

    flops = 2 * b_pad * (INPUT_SIZE * HIDDEN + HIDDEN * OUT)
    bytes_accessed = (
        x_bf.size * 2 + w1_bf.size * 2 + w2_bf.size * 2
        + b1_f.size * 4 + b2_f.size * 4 + b_pad * OUT * 4
    )

    out = pl.pallas_call(
        classifier_kernel,
        out_shape=jax.ShapeDtypeStruct((b_pad, OUT), jnp.float32),
        grid_spec=pltpu.PrefetchScalarGridSpec(
            num_scalar_prefetch=0,
            grid=grid,
            in_specs=[
                pl.BlockSpec((tile_m, INPUT_SIZE), lambda i: (i, 0)),   # x tile (streamed)
                pl.BlockSpec((INPUT_SIZE, HIDDEN), lambda i: (0, 0)),   # w1 (resident)
                pl.BlockSpec((1, HIDDEN), lambda i: (0, 0)),            # b1 (resident)
                pl.BlockSpec((HIDDEN, OUT), lambda i: (0, 0)),          # w2 (resident)
                pl.BlockSpec((1, OUT), lambda i: (0, 0)),               # b2 (resident)
            ],
            out_specs=pl.BlockSpec((tile_m, OUT), lambda i: (i, 0)),
        ),
        compiler_params=pltpu.CompilerParams(
            dimension_semantics=("parallel",),
        ),
        cost_estimate=pl.CostEstimate(
            flops=flops, transcendentals=0, bytes_accessed=bytes_accessed),
    )(x_bf, w1_bf, b1_f, w2_bf, b2_f)

    return out[:B]


def reference_forward(x, w1, b1, w2, b2):
    h = jnp.where(x @ w1 + b1 > 0, x @ w1 + b1, NEG_SLOPE * (x @ w1 + b1))
    y = h @ w2 + b2
    return jnp.where(y > 0, y, NEG_SLOPE * y)


if __name__ == "__main__":
    key = jax.random.PRNGKey(0)
    k_x, k_w1, k_b1, k_w2, k_b2 = jax.random.split(key, 5)

    batch = 100  # small, not a multiple of the tile: exercises the pad/slice path
    x = jax.random.normal(k_x, (batch, INPUT_SIZE), dtype=jnp.float32)

    # nn.Linear-style init: U(-1/sqrt(fan_in), 1/sqrt(fan_in))
    bound1 = 1.0 / jnp.sqrt(jnp.float32(INPUT_SIZE))
    w1 = jax.random.uniform(k_w1, (INPUT_SIZE, HIDDEN), jnp.float32, -bound1, bound1)
    b1 = jax.random.uniform(k_b1, (1, HIDDEN), jnp.float32, -bound1, bound1)
    bound2 = 1.0 / jnp.sqrt(jnp.float32(HIDDEN))
    w2 = jax.random.uniform(k_w2, (HIDDEN, OUT), jnp.float32, -bound2, bound2)
    b2 = jax.random.uniform(k_b2, (1, OUT), jnp.float32, -bound2, bound2)

    out = classifier_forward(x, w1, b1, w2, b2)
    out = jax.block_until_ready(out)

    ref = reference_forward(x, w1, b1, w2, b2)
    assert out.shape == (batch, OUT)
    # bf16 input/weight streaming => relax tolerance vs full-f32 reference.
    assert jnp.allclose(out, ref, atol=2e-2, rtol=2e-2), "mismatch vs reference"

    print("KERNEL_OK")
</pallas_src>

<mosaic_0001>
module attributes {stable_mosaic.version = 11 : i64} {
  func.func @classifier_kernel(%arg0: i32, %arg1: memref<104x80xbf16, #tpu.memory_space<vmem>>, %arg2: memref<80x256xbf16, #tpu.memory_space<vmem>>, %arg3: memref<1x256xf32, #tpu.memory_space<vmem>>, %arg4: memref<256x3xbf16, #tpu.memory_space<vmem>>, %arg5: memref<1x3xf32, #tpu.memory_space<vmem>>, %arg6: memref<104x3xf32, #tpu.memory_space<vmem>>) attributes {dimension_semantics = [#tpu.dimension_semantics<parallel>], iteration_bounds = array<i64: 1>, scalar_prefetch = 0 : i64, scratch_operands = 0 : i64, tpu.core_type = #tpu.core_type<tc>, window_params = [{transform_indices = @transform_0, window_bounds = array<i64: 104, 80>}, {pipeline_mode = #tpu.pipeline_mode<synchronous>, transform_indices = @transform_1, window_bounds = array<i64: 80, 256>}, {pipeline_mode = #tpu.pipeline_mode<synchronous>, transform_indices = @transform_2, window_bounds = array<i64: 1, 256>}, {pipeline_mode = #tpu.pipeline_mode<synchronous>, transform_indices = @transform_3, window_bounds = array<i64: 256, 3>}, {pipeline_mode = #tpu.pipeline_mode<synchronous>, transform_indices = @transform_4, window_bounds = array<i64: 1, 3>}, {transform_indices = @transform_5, window_bounds = array<i64: 104, 3>}]} {
    %c0 = arith.constant 0 : index
    %c0_0 = arith.constant 0 : index
    %0 = vector.load %arg1[%c0, %c0_0] : memref<104x80xbf16, #tpu.memory_space<vmem>>, vector<104x80xbf16>
    %c0_1 = arith.constant 0 : index
    %c0_2 = arith.constant 0 : index
    %1 = vector.load %arg2[%c0_1, %c0_2] : memref<80x256xbf16, #tpu.memory_space<vmem>>, vector<80x256xbf16>
    %cst = arith.constant dense<0.000000e+00> : vector<104x256xf32>
    %2 = tpu.matmul %0, %1, %cst {dimension_numbers = #tpu.dot_dimension_numbers<[1], [0], [0], [1], [0, 0, 1, 1], [], []>} : vector<104x80xbf16>, vector<80x256xbf16>, vector<104x256xf32> -> vector<104x256xf32>
    %c0_3 = arith.constant 0 : index
    %c0_4 = arith.constant 0 : index
    %3 = vector.load %arg3[%c0_3, %c0_4] : memref<1x256xf32, #tpu.memory_space<vmem>>, vector<1x256xf32>
    %4 = vector.broadcast %3 : vector<1x256xf32> to vector<104x256xf32>
    %5 = arith.addf %2, %4 : vector<104x256xf32>
    %cst_5 = arith.constant 2.000000e-01 : f32
    %6 = vector.broadcast %cst_5 : f32 to vector<104x256xf32>
    %7 = arith.mulf %6, %5 : vector<104x256xf32>
    %8 = arith.maximumf %5, %7 : vector<104x256xf32>
    %9 = arith.truncf %8 : vector<104x256xf32> to vector<104x256xbf16>
    %c0_6 = arith.constant 0 : index
    %c0_7 = arith.constant 0 : index
    %10 = vector.load %arg4[%c0_6, %c0_7] : memref<256x3xbf16, #tpu.memory_space<vmem>>, vector<256x3xbf16>
    %cst_8 = arith.constant dense<0.000000e+00> : vector<104x3xf32>
    %11 = tpu.matmul %9, %10, %cst_8 {dimension_numbers = #tpu.dot_dimension_numbers<[1], [0], [0], [1], [0, 0, 1, 1], [], []>} : vector<104x256xbf16>, vector<256x3xbf16>, vector<104x3xf32> -> vector<104x3xf32>
    %c0_9 = arith.constant 0 : index
    %c0_10 = arith.constant 0 : index
    %12 = vector.load %arg5[%c0_9, %c0_10] : memref<1x3xf32, #tpu.memory_space<vmem>>, vector<1x3xf32>
    %13 = vector.broadcast %12 : vector<1x3xf32> to vector<104x3xf32>
    %14 = arith.addf %11, %13 : vector<104x3xf32>
    %cst_11 = arith.constant 2.000000e-01 : f32
    %15 = vector.broadcast %cst_11 : f32 to vector<104x3xf32>
    %16 = arith.mulf %15, %14 : vector<104x3xf32>
    %17 = arith.maximumf %14, %16 : vector<104x3xf32>
    %c0_12 = arith.constant 0 : index
    %c0_13 = arith.constant 0 : index
    %18 = vector.load %arg6[%c0_12, %c0_13] : memref<104x3xf32, #tpu.memory_space<vmem>>, vector<104x3xf32>
    tpu.vector_store %arg6[%c0_12, %c0_13], %17 {strides = array<i32>} : memref<104x3xf32, #tpu.memory_space<vmem>>, vector<104x3xf32>,
    return
  }
  func.func @transform_0(%arg0: i32) -> (i32, i32) {
    %c0_i32 = arith.constant 0 : i32
    %c0_i32_0 = arith.constant 0 : i32
    return %arg0, %c0_i32 : i32, i32
  }
  func.func @transform_1(%arg0: i32) -> (i32, i32) {
    %c0_i32 = arith.constant 0 : i32
    %c0_i32_0 = arith.constant 0 : i32
    %c0_i32_1 = arith.constant 0 : i32
    return %c0_i32, %c0_i32_0 : i32, i32
  }
  func.func @transform_2(%arg0: i32) -> (i32, i32) {
    %c0_i32 = arith.constant 0 : i32
    %c0_i32_0 = arith.constant 0 : i32
    %c0_i32_1 = arith.constant 0 : i32
    return %c0_i32, %c0_i32_0 : i32, i32
  }
  func.func @transform_3(%arg0: i32) -> (i32, i32) {
    %c0_i32 = arith.constant 0 : i32
    %c0_i32_0 = arith.constant 0 : i32
    %c0_i32_1 = arith.constant 0 : i32
    return %c0_i32, %c0_i32_0 : i32, i32
  }
  func.func @transform_4(%arg0: i32) -> (i32, i32) {
    %c0_i32 = arith.constant 0 : i32
    %c0_i32_0 = arith.constant 0 : i32
    %c0_i32_1 = arith.constant 0 : i32
    return %c0_i32, %c0_i32_0 : i32, i32
  }
  func.func @transform_5(%arg0: i32) -> (i32, i32) {
    %c0_i32 = arith.constant 0 : i32
    %c0_i32_0 = arith.constant 0 : i32
    return %arg0, %c0_i32 : i32, i32
  }
}

</mosaic_0001>

<bundles_post_ra>
// kernel: tpu_custom_call.1
= control target key start
LH: loop header
LB: loop body
LE: loop exit
PB: predicated region body
PF: predicated region fallthrough
CT: control target
= control target key end

     0   :  { %v733_v1 = vmov 0   ;;  %vm139_vm0 = vcmask 654336   ;;  %v46_v34 = vlaneseq  ;;  %vm577_vm1 = vcmask 23552   ;;  %s973_s1 = inlined_call_operand.vmem [shape: bf16[80,256], index: 1, kind: input, shape index: {}]   ;;  %s974_s0 = inlined_call_operand.vmem [shape: bf16[104,80], index: 0, kind: input, shape index: {}]   ;;  %s975_s3 = inlined_call_operand.vmem [shape: bf16[256,3], index: 3, kind: input, shape index: {}]   ;;  %s976_s2 = inlined_call_operand.vmem [shape: f32[1,256], index: 2, kind: input, shape index: {}]   ;;  %s977_s4 = inlined_call_operand.vmem [shape: f32[1,3], index: 4, kind: input, shape index: {}]   ;;  %s978_s5 = inlined_call_operand.vmem [shape: f32[104,3], index: 5, kind: output, shape index: {}]  }
   0x1   :  { %v695_v0 = vld [vmem:[%s973_s1 + $0x4] ss:$8 sps:$4 sm:$0xff]   ;;  %193 = vmatprep.mubr.bf16.mxu0 %v733_v1  ;;  %v697_v2 = vld [vmem:[%s973_s1] ss:$8 sps:$4 sm:$0xff]   ;;  %v698_v3 = vld [vmem:[%s973_s1 + $0x14] ss:$8 sps:$4 sm:$0xff]  }
   0x2   :  { %161 = vmatprep.subr.bf16.mxu0 %v695_v0  ;;  %v700_v4 = vld [vmem:[%s973_s1 + $0x10] ss:$8 sps:$4 sm:$0xff]   ;;  %v701_v5 = vld [vmem:[%s973_s1 + $0x24] ss:$8 sps:$4 sm:$0xff]   ;;  %v703_v6 = vld [vmem:[%s973_s1 + $0x20] ss:$8 sps:$4 sm:$0xff]  }
   0x3   :  { %162 = vmatpush1.bf16.msra.mxu0 %v697_v2  ;;  %v704_v7 = vld [vmem:[%s973_s1 + $0x34] ss:$8 sps:$4 sm:$0xff]   ;;  %v706_v8 = vld [vmem:[%s973_s1 + $0x30] ss:$8 sps:$4 sm:$0xff]   ;;  %v707_v9 = vld [vmem:[%s973_s1 + $0x44] ss:$8 sps:$4 sm:$0xff]  }
   0x4   :  { %163 = vmatprep.subr.bf16.mxu0 %v698_v3  ;;  %v709_v10 = vld [vmem:[%s973_s1 + $0x40] ss:$8 sps:$4 sm:$0xff]   ;;  %v721_v16 = vld [vmem:[%s975_s3 + $0x50] sm:$0xff]   ;;  %v723_v18 = vld [vmem:[%s975_s3 + $0x58] sm:$0xff]   ;;  %v47_v35 = vshrl.u32 %v46_v34, 7 }
   0x5   :  { %v717_v11 = vld [vmem:[%s975_s3 + $0x40] sm:$0xff]   ;;  %v719_v14 = vld [vmem:[%s975_s3 + $0x48] sm:$0xff]   ;;  %v722_v17 = vld [vmem:[%s975_s3 + $0x10] sm:$0xff]  }
   0x6   :  { %v718_v12 = vld [vmem:[%s975_s3] sm:$0xff]   ;;  %636 = vmatprep.subr.bf16.mxu1 %v717_v11  ;;  %v720_v15 = vld [vmem:[%s975_s3 + $0x8] sm:$0xff]   ;;  %v724_v19 = vld [vmem:[%s975_s3 + $0x18] sm:$0xff]   ;;  %v48_v36 = vsub.s32 0, %v47_v35  ;;  %v52_v38 = vsub.s32 1, %v47_v35 }
   0x7   :  { %164 = vmatpush1.bf16.msra.mxu0 %v700_v4  ;;  %v710_v13 = vld [vmem:[%s974_s0] sm:$0xff]   ;;  %637 = vmatpush3.bf16.msra.mxu1 %v718_v12  ;;  %v711_v20 = vld [vmem:[%s974_s0 + $0x8] sm:$0xff]   ;;  %v712_v23 = vld [vmem:[%s974_s0 + $0x10] sm:$0xff]  }
   0x8   :  { %165 = vmatprep.subr.bf16.mxu0 %v701_v5  ;;  %638 = vmatprep.subr.bf16.mxu1 %v719_v14  ;;  %v725_v21 = vld [vmem:[%s975_s3 + $0x60] sm:$0xff]   ;;  %v713_v24 = vld [vmem:[%s974_s0 + $0x18] sm:$0xff]   ;;  %v715_v26 = vld [vmem:[%s974_s0 + $0x28] sm:$0xff]  }
   0x9   :  { %v726_v22 = vld [vmem:[%s975_s3 + $0x20] sm:$0xff]   ;;  %v716_v27 = vld [vmem:[%s974_s0 + $0x30] ss:$0 sps:$4 sm:$0xff]   ;;  %v727_v28 = vld [vmem:[%s975_s3 + $0x68] sm:$0xff]  }
   0xa   :  { %v714_v25 = vld [vmem:[%s974_s0 + $0x20] sm:$0xff]   ;;  %v728_v29 = vld [vmem:[%s975_s3 + $0x28] sm:$0xff]   ;;  %v729_v30 = vld [vmem:[%s975_s3 + $0x70] sm:$0xff]  }
   0xb   :  { %166 = vmatpush1.bf16.msra.mxu0 %v703_v6  ;;  %639 = vmatpush3.bf16.msra.mxu1 %v720_v15  ;;  %v730_v31 = vld [vmem:[%s975_s3 + $0x30] sm:$0xff]   ;;  %v731_v32 = vld [vmem:[%s975_s3 + $0x78] sm:$0xff]   ;;  %v44_v37 = vld [vmem:[%s976_s2] sm:$0x3] }
   0xc   :  { %167 = vmatprep.subr.bf16.mxu0 %v704_v7  ;;  %640 = vmatprep.subr.bf16.mxu1 %v721_v16  ;;  %v732_v33 = vld [vmem:[%s975_s3 + $0x38] sm:$0xff]   ;;  %v873_v39 = vrot.slane %v44_v37, %v48_v36  ;;  %v875_v40 = vrot.slane %v44_v37, %v52_v38 }
   0xf   :  { %168 = vmatpush1.bf16.msra.mxu0 %v706_v8  ;;  %641 = vmatpush3.bf16.msra.mxu1 %v722_v17 }
  0x10   :  { %169 = vmatprep.subr.bf16.mxu0 %v707_v9  ;;  %642 = vmatprep.subr.bf16.mxu1 %v723_v18 }
  0x13   :  { %170 = vmatpush1.bf16.msra.mxu0 %v709_v10  ;;  %643 = vmatpush3.bf16.msra.mxu1 %v724_v19 }
  0x14   :  { %644 = vmatprep.subr.bf16.mxu1 %v725_v21 }
  0x16   :  { %612 = vmatmul.mubr.msk.bf16.vlgmr.msra.gmra.mrb[0].mxu0 %vm139_vm0, %v710_v13 }
  0x17   :  { %203 = vmatprep.mubr.bf16.mxu0 %v733_v1  ;;  %645 = vmatpush3.bf16.msra.mxu1 %v726_v22 }
  0x18   :  { %646 = vmatprep.subr.bf16.mxu1 %v727_v28 }
  0x1b   :  { %647 = vmatpush3.bf16.msra.mxu1 %v728_v29 }
  0x1c   :  { %648 = vmatprep.subr.bf16.mxu1 %v729_v30 }
  0x1e   :  { %613 = vmatmul.mubr.msk.bf16.gmra.mrb[4].mxu0 %vm139_vm0, %v711_v20 }
  0x1f   :  { %213 = vmatprep.mubr.bf16.mxu0 %v733_v1  ;;  %649 = vmatpush3.bf16.msra.mxu1 %v730_v31 }
  0x20   :  { %650 = vmatprep.subr.bf16.mxu1 %v731_v32 }
  0x23   :  { %651 = vmatpush3.bf16.msra.mxu1 %v732_v33 }
  0x26   :  { %614 = vmatmul.mubr.msk.bf16.gmra.mrb[8].mxu0 %vm139_vm0, %v712_v23 }
  0x27   :  { %223 = vmatprep.mubr.bf16.mxu0 %v733_v1 }
  0x2e   :  { %615 = vmatmul.mubr.msk.bf16.gmra.mrb[12].mxu0 %vm139_vm0, %v713_v24 }
  0x2f   :  { %233 = vmatprep.mubr.bf16.mxu0 %v733_v1 }
  0x36   :  { %616 = vmatmul.mubr.msk.bf16.gmra.mrb[16].mxu0 %vm139_vm0, %v714_v25 }
  0x37   :  { %243 = vmatprep.mubr.bf16.mxu0 %v733_v1 }
  0x3e   :  { %617 = vmatmul.mubr.msk.bf16.gmra.mrb[20].mxu0 %vm139_vm0, %v715_v26 }
  0x3f   :  { %253 = vmatprep.mubr.bf16.mxu0 %v733_v1 }
  0x46   :  { %618 = vmatmul.mubr.msk.bf16.gmra.mrb[24].mxu0 %vm139_vm0, %v716_v27 }
  0xe9   :  { %v195_v41 = vpop.f32.mrb[0].mxu0 }
  0xea   :  { %v196_v42 = vadd.f32 %v195_v41, %v873_v39  ;;  %v197_v43 = vpop.f32.mrb[1].mxu0 }
  0xeb   :  { %v198_v44 = vadd.f32 %v197_v43, %v875_v40  ;;  %v199_v45 = vpop.f32.mrb[2].mxu0 }
  0xec   :  { %v262_v46 = vmul.f32 0.2, %v196_v42  ;;  %v200_v47 = vadd.f32 %v199_v45, %v873_v39  ;;  %v201_v48 = vpop.f32.mrb[3].mxu0 }
  0xed   :  { %v263_v49 = vmul.f32 0.2, %v198_v44  ;;  %v202_v50 = vadd.f32 %v201_v48, %v875_v40 }
  0xee   :  { %v264_v51 = vmul.f32 0.2, %v200_v47  ;;  %v288_v53 = vmax.f32 %v196_v42, %v262_v46 }
  0xef   :  { %v265_v52 = vmul.f32 0.2, %v202_v50  ;;  %v289_v56 = vmax.f32 %v198_v44, %v263_v49 }
  0xf0   :  { %v290_v54 = vmax.f32 %v200_v47, %v264_v51 }
  0xf1   :  { %v205_v55 = vpop.f32.mrb[4].mxu0  ;;  %v291_v57 = vmax.f32 %v202_v50, %v265_v52 }
  0xf2   :  { %v206_v58 = vadd.f32 %v205_v55, %v873_v39  ;;  %v207_v59 = vpop.f32.mrb[5].mxu0  ;;  %v314_v60 = vpack.c.bf16 %v290_v54, %v288_v53 }
  0xf3   :  { %v208_v61 = vadd.f32 %v207_v59, %v875_v40  ;;  %v209_v62 = vpop.f32.mrb[6].mxu0  ;;  %v315_v63 = vpack.c.bf16 %v291_v57, %v289_v56 }
  0xf4   :  { %v266_v0 = vmul.f32 0.2, %v206_v58  ;;  %v210_v1 = vadd.f32 %v209_v62, %v873_v39  ;;  %v211_v2 = vpop.f32.mrb[7].mxu0 }
  0xf5   :  { %v267_v3 = vmul.f32 0.2, %v208_v61  ;;  %v212_v4 = vadd.f32 %v211_v2, %v875_v40  ;;  %495 = vmatprep.mubr.bf16.mxu1 %v315_v63 }
  0xf6   :  { %v268_v5 = vmul.f32 0.2, %v210_v1  ;;  %496 = vmatmul.mubr.bf16.vlgmr.msra.gmra.mrb[0].mxu1 %v314_v60  ;;  %v292_v7 = vmax.f32 %v206_v58, %v266_v0 }
  0xf7   :  { %v269_v6 = vmul.f32 0.2, %v212_v4  ;;  %v293_v9 = vmax.f32 %v208_v61, %v267_v3 }
  0xf8   :  { %v294_v8 = vmax.f32 %v210_v1, %v268_v5 }
  0xf9   :  { %v295_v10 = vmax.f32 %v212_v4, %v269_v6  ;;  %v215_v11 = vpop.f32.mrb[8].mxu0 }
  0xfa   :  { %v216_v12 = vadd.f32 %v215_v11, %v873_v39  ;;  %v217_v13 = vpop.f32.mrb[9].mxu0  ;;  %v316_v14 = vpack.c.bf16 %v294_v8, %v292_v7 }
  0xfb   :  { %v218_v15 = vadd.f32 %v217_v13, %v875_v40  ;;  %v219_v16 = vpop.f32.mrb[10].mxu0  ;;  %v317_v17 = vpack.c.bf16 %v295_v10, %v293_v9 }
  0xfc   :  { %v270_v18 = vmul.f32 0.2, %v216_v12  ;;  %v220_v19 = vadd.f32 %v219_v16, %v873_v39  ;;  %v221_v20 = vpop.f32.mrb[11].mxu0 }
  0xfd   :  { %v271_v21 = vmul.f32 0.2, %v218_v15  ;;  %v222_v22 = vadd.f32 %v221_v20, %v875_v40  ;;  %503 = vmatprep.mubr.bf16.mxu1 %v317_v17 }
  0xfe   :  { %v272_v23 = vmul.f32 0.2, %v220_v19  ;;  %504 = vmatmul.mubr.bf16.gmra.mrb[4].mxu1 %v316_v14  ;;  %v296_v25 = vmax.f32 %v216_v12, %v270_v18 }
  0xff   :  { %v273_v24 = vmul.f32 0.2, %v222_v22  ;;  %v297_v27 = vmax.f32 %v218_v15, %v271_v21 }
 0x100   :  { %v298_v26 = vmax.f32 %v220_v19, %v272_v23 }
 0x101   :  { %v299_v28 = vmax.f32 %v222_v22, %v273_v24  ;;  %v225_v29 = vpop.f32.mrb[12].mxu0 }
 0x102   :  { %v226_v30 = vadd.f32 %v225_v29, %v873_v39  ;;  %v227_v31 = vpop.f32.mrb[13].mxu0  ;;  %v318_v32 = vpack.c.bf16 %v298_v26, %v296_v25 }
 0x103   :  { %v228_v33 = vadd.f32 %v227_v31, %v875_v40  ;;  %v229_v34 = vpop.f32.mrb[14].mxu0  ;;  %v319_v35 = vpack.c.bf16 %v299_v28, %v297_v27 }
 0x104   :  { %v274_v36 = vmul.f32 0.2, %v226_v30  ;;  %v230_v37 = vadd.f32 %v229_v34, %v873_v39  ;;  %v231_v38 = vpop.f32.mrb[15].mxu0 }
 0x105   :  { %v275_v41 = vmul.f32 0.2, %v228_v33  ;;  %v232_v42 = vadd.f32 %v231_v38, %v875_v40  ;;  %511 = vmatprep.mubr.bf16.mxu1 %v319_v35 }
 0x106   :  { %v276_v43 = vmul.f32 0.2, %v230_v37  ;;  %512 = vmatmul.mubr.bf16.gmra.mrb[8].mxu1 %v318_v32  ;;  %v300_v45 = vmax.f32 %v226_v30, %v274_v36 }
 0x107   :  { %v277_v44 = vmul.f32 0.2, %v232_v42  ;;  %v301_v47 = vmax.f32 %v228_v33, %v275_v41 }
 0x108   :  { %v302_v46 = vmax.f32 %v230_v37, %v276_v43 }
 0x109   :  { %v303_v48 = vmax.f32 %v232_v42, %v277_v44  ;;  %v235_v49 = vpop.f32.mrb[16].mxu0 }
 0x10a   :  { %v236_v50 = vadd.f32 %v235_v49, %v873_v39  ;;  %v237_v51 = vpop.f32.mrb[17].mxu0  ;;  %v320_v52 = vpack.c.bf16 %v302_v46, %v300_v45 }
 0x10b   :  { %v238_v53 = vadd.f32 %v237_v51, %v875_v40  ;;  %v239_v54 = vpop.f32.mrb[18].mxu0  ;;  %v321_v55 = vpack.c.bf16 %v303_v48, %v301_v47 }
 0x10c   :  { %v278_v56 = vmul.f32 0.2, %v236_v50  ;;  %v240_v57 = vadd.f32 %v239_v54, %v873_v39  ;;  %v241_v58 = vpop.f32.mrb[19].mxu0 }
 0x10d   :  { %v279_v59 = vmul.f32 0.2, %v238_v53  ;;  %v242_v60 = vadd.f32 %v241_v58, %v875_v40  ;;  %519 = vmatprep.mubr.bf16.mxu1 %v321_v55 }
 0x10e   :  { %v280_v61 = vmul.f32 0.2, %v240_v57  ;;  %520 = vmatmul.mubr.bf16.gmra.mrb[12].mxu1 %v320_v52  ;;  %v304_v63 = vmax.f32 %v236_v50, %v278_v56 }
 0x10f   :  { %v281_v62 = vmul.f32 0.2, %v242_v60  ;;  %v305_v1 = vmax.f32 %v238_v53, %v279_v59 }
 0x110   :  { %v306_v0 = vmax.f32 %v240_v57, %v280_v61 }
 0x111   :  { %v307_v2 = vmax.f32 %v242_v60, %v281_v62  ;;  %v245_v3 = vpop.f32.mrb[20].mxu0 }
 0x112   :  { %v246_v4 = vadd.f32 %v245_v3, %v873_v39  ;;  %v247_v5 = vpop.f32.mrb[21].mxu0  ;;  %v322_v6 = vpack.c.bf16 %v306_v0, %v304_v63 }
 0x113   :  { %v248_v7 = vadd.f32 %v247_v5, %v875_v40  ;;  %v249_v8 = vpop.f32.mrb[22].mxu0  ;;  %v323_v9 = vpack.c.bf16 %v307_v2, %v305_v1 }
 0x114   :  { %v282_v10 = vmul.f32 0.2, %v246_v4  ;;  %v250_v11 = vadd.f32 %v249_v8, %v873_v39  ;;  %v251_v12 = vpop.f32.mrb[23].mxu0 }
 0x115   :  { %v283_v13 = vmul.f32 0.2, %v248_v7  ;;  %v252_v14 = vadd.f32 %v251_v12, %v875_v40  ;;  %527 = vmatprep.mubr.bf16.mxu1 %v323_v9 }
 0x116   :  { %v284_v15 = vmul.f32 0.2, %v250_v11  ;;  %528 = vmatmul.mubr.bf16.gmra.mrb[16].mxu1 %v322_v6  ;;  %v308_v17 = vmax.f32 %v246_v4, %v282_v10 }
 0x117   :  { %v285_v16 = vmul.f32 0.2, %v252_v14  ;;  %v309_v19 = vmax.f32 %v248_v7, %v283_v13 }
 0x118   :  { %v310_v18 = vmax.f32 %v250_v11, %v284_v15 }
 0x119   :  { %v311_v20 = vmax.f32 %v252_v14, %v285_v16  ;;  %v255_v21 = vpop.f32.mrb[24].mxu0 }
 0x11a   :  { %v256_v22 = vadd.f32 %v255_v21, %v873_v39  ;;  %v257_v23 = vpop.f32.mrb[25].mxu0  ;;  %v324_v24 = vpack.c.bf16 %v310_v18, %v308_v17  ;;  %v906_v39 = vld [vmem:[%s977_s4] ss:$0 sm:$0xff] }
 0x11b   :  { %v258_v25 = vadd.f32 %v257_v23, %v875_v40  ;;  %v259_v26 = vpop.f32.mrb[26].mxu0  ;;  %v325_v27 = vpack.c.bf16 %v311_v20, %v309_v19 }
 0x11c   :  { %v286_v28 = vmul.f32 0.2, %v256_v22  ;;  %v260_v29 = vpop.f32.mrb[27].mxu0 }
 0x11d   :  { %v287_v30 = vmul.f32 0.2, %v258_v25  ;;  %535 = vmatprep.mubr.bf16.mxu1 %v325_v27 }
 0x11e   :  { %536 = vmatmul.mubr.bf16.gmra.mrb[20].mxu1 %v324_v24  ;;  %v312_v32 = vmax.f32 %v256_v22, %v286_v28 }
 0x11f   :  { %v313_v31 = vmax.f32 %v258_v25, %v287_v30 }
 0x120   :  { %v326_v34 = vpack.c.bf16 %v312_v32, %v312_v32 }
 0x121   :  { %v327_v33 = vpack.c.bf16 %v313_v31, %v313_v31 }
 0x123   :  { %543 = vmatprep.mubr.bf16.mxu1 %v327_v33 }
 0x126   :  { %544 = vmatmul.mubr.bf16.gmra.mrb[24].mxu1 %v326_v34 }
 0x1c9   :  { %v652_v35 = vpop.f32.mrb[0].mxu1 }
 0x1ca   :  { %v653_v40 = vpop.f32.mrb[1].mxu1 }
 0x1cb   :  { %v654_v36 = vadd.f32 %v653_v40, %v652_v35  ;;  %v655_v37 = vpop.f32.mrb[2].mxu1 }
 0x1cc   :  { %v656_v38 = vpop.f32.mrb[3].mxu1 }
 0x1cd   :  { %v498_v41 = vadd.f32 %v654_v36, %v906_v39  ;;  %v657_v42 = vadd.f32 %v656_v38, %v655_v37 }
 0x1cf   :  { %v551_v43 = vmul.f32 0.2, %v498_v41  ;;  %v501_v44 = vadd.f32 %v657_v42, %v906_v39 }
 0x1d1   :  { %v564_v45 = vmax.f32 %v498_v41, %v551_v43  ;;  %v552_v46 = vmul.f32 0.2, %v501_v44  ;;  %v658_v47 = vpop.f32.mrb[4].mxu1 }
 0x1d2   :  { %v659_v48 = vpop.f32.mrb[5].mxu1 }
 0x1d3   :  { %578 = vst.msk [vmem:[%s978_s5] sm:$0xff] %vm577_vm1, %v564_v45  ;;  %v565_v49 = vmax.f32 %v501_v44, %v552_v46  ;;  %v660_v50 = vadd.f32 %v659_v48, %v658_v47  ;;  %v661_v51 = vpop.f32.mrb[6].mxu1 }
 0x1d4   :  { %v662_v52 = vpop.f32.mrb[7].mxu1 }
 0x1d5   :  { %579 = vst.msk [vmem:[%s978_s5 + $0x8] sm:$0xff] %vm577_vm1, %v565_v49  ;;  %v506_v53 = vadd.f32 %v660_v50, %v906_v39  ;;  %v663_v54 = vadd.f32 %v662_v52, %v661_v51 }
 0x1d7   :  { %v553_v55 = vmul.f32 0.2, %v506_v53  ;;  %v509_v56 = vadd.f32 %v663_v54, %v906_v39 }
 0x1d9   :  { %v566_v57 = vmax.f32 %v506_v53, %v553_v55  ;;  %v554_v58 = vmul.f32 0.2, %v509_v56  ;;  %v664_v59 = vpop.f32.mrb[8].mxu1 }
 0x1da   :  { %v665_v60 = vpop.f32.mrb[9].mxu1 }
 0x1db   :  { %580 = vst.msk [vmem:[%s978_s5 + $0x10] sm:$0xff] %vm577_vm1, %v566_v57  ;;  %v567_v61 = vmax.f32 %v509_v56, %v554_v58  ;;  %v666_v62 = vadd.f32 %v665_v60, %v664_v59  ;;  %v667_v63 = vpop.f32.mrb[10].mxu1 }
 0x1dc   :  { %v668_v0 = vpop.f32.mrb[11].mxu1 }
 0x1dd   :  { %581 = vst.msk [vmem:[%s978_s5 + $0x18] sm:$0xff] %vm577_vm1, %v567_v61  ;;  %v514_v1 = vadd.f32 %v666_v62, %v906_v39  ;;  %v669_v2 = vadd.f32 %v668_v0, %v667_v63 }
 0x1df   :  { %v555_v3 = vmul.f32 0.2, %v514_v1  ;;  %v517_v4 = vadd.f32 %v669_v2, %v906_v39 }
 0x1e1   :  { %v568_v5 = vmax.f32 %v514_v1, %v555_v3  ;;  %v556_v6 = vmul.f32 0.2, %v517_v4  ;;  %v670_v7 = vpop.f32.mrb[12].mxu1 }
 0x1e2   :  { %v671_v8 = vpop.f32.mrb[13].mxu1 }
 0x1e3   :  { %582 = vst.msk [vmem:[%s978_s5 + $0x20] sm:$0xff] %vm577_vm1, %v568_v5  ;;  %v569_v9 = vmax.f32 %v517_v4, %v556_v6  ;;  %v672_v10 = vadd.f32 %v671_v8, %v670_v7  ;;  %v673_v11 = vpop.f32.mrb[14].mxu1 }
 0x1e4   :  { %v674_v12 = vpop.f32.mrb[15].mxu1 }
 0x1e5   :  { %583 = vst.msk [vmem:[%s978_s5 + $0x28] sm:$0xff] %vm577_vm1, %v569_v9  ;;  %v522_v13 = vadd.f32 %v672_v10, %v906_v39  ;;  %v675_v14 = vadd.f32 %v674_v12, %v673_v11 }
 0x1e7   :  { %v557_v15 = vmul.f32 0.2, %v522_v13  ;;  %v525_v16 = vadd.f32 %v675_v14, %v906_v39 }
 0x1e9   :  { %v570_v17 = vmax.f32 %v522_v13, %v557_v15  ;;  %v558_v18 = vmul.f32 0.2, %v525_v16  ;;  %v676_v19 = vpop.f32.mrb[16].mxu1 }
 0x1ea   :  { %v677_v20 = vpop.f32.mrb[17].mxu1 }
 0x1eb   :  { %584 = vst.msk [vmem:[%s978_s5 + $0x30] sm:$0xff] %vm577_vm1, %v570_v17  ;;  %v571_v21 = vmax.f32 %v525_v16, %v558_v18  ;;  %v678_v22 = vadd.f32 %v677_v20, %v676_v19  ;;  %v679_v23 = vpop.f32.mrb[18].mxu1 }
 0x1ec   :  { %v680_v24 = vpop.f32.mrb[19].mxu1 }
 0x1ed   :  { %585 = vst.msk [vmem:[%s978_s5 + $0x38] sm:$0xff] %vm577_vm1, %v571_v21  ;;  %v530_v25 = vadd.f32 %v678_v22, %v906_v39  ;;  %v681_v26 = vadd.f32 %v680_v24, %v679_v23 }
 0x1ef   :  { %v559_v27 = vmul.f32 0.2, %v530_v25  ;;  %v533_v28 = vadd.f32 %v681_v26, %v906_v39 }
 0x1f1   :  { %v572_v29 = vmax.f32 %v530_v25, %v559_v27  ;;  %v560_v30 = vmul.f32 0.2, %v533_v28  ;;  %v682_v31 = vpop.f32.mrb[20].mxu1 }
 0x1f2   :  { %v683_v32 = vpop.f32.mrb[21].mxu1 }
 0x1f3   :  { %586 = vst.msk [vmem:[%s978_s5 + $0x40] sm:$0xff] %vm577_vm1, %v572_v29  ;;  %v573_v33 = vmax.f32 %v533_v28, %v560_v30  ;;  %v684_v34 = vadd.f32 %v683_v32, %v682_v31  ;;  %v685_v35 = vpop.f32.mrb[22].mxu1 }
 0x1f4   :  { %v686_v40 = vpop.f32.mrb[23].mxu1 }
 0x1f5   :  { %587 = vst.msk [vmem:[%s978_s5 + $0x48] sm:$0xff] %vm577_vm1, %v573_v33  ;;  %v538_v36 = vadd.f32 %v684_v34, %v906_v39  ;;  %v687_v37 = vadd.f32 %v686_v40, %v685_v35 }
 0x1f7   :  { %v561_v38 = vmul.f32 0.2, %v538_v36  ;;  %v541_v41 = vadd.f32 %v687_v37, %v906_v39 }
 0x1f9   :  { %v574_v42 = vmax.f32 %v538_v36, %v561_v38  ;;  %v562_v43 = vmul.f32 0.2, %v541_v41  ;;  %v688_v44 = vpop.f32.mrb[24].mxu1 }
 0x1fa   :  { %v689_v45 = vpop.f32.mrb[25].mxu1 }
 0x1fb   :  { %588 = vst.msk [vmem:[%s978_s5 + $0x50] sm:$0xff] %vm577_vm1, %v574_v42  ;;  %v575_v46 = vmax.f32 %v541_v41, %v562_v43  ;;  %v690_v47 = vadd.f32 %v689_v45, %v688_v44  ;;  %v691_v48 = vpop.f32.mrb[26].mxu1 }
 0x1fc   :  { %v692_v49 = vpop.f32.mrb[27].mxu1 }
 0x1fd   :  { %589 = vst.msk [vmem:[%s978_s5 + $0x58] sm:$0xff] %vm577_vm1, %v575_v46  ;;  %v546_v50 = vadd.f32 %v690_v47, %v906_v39 }
 0x1ff   :  { %v563_v51 = vmul.f32 0.2, %v546_v50 }
 0x201   :  { %v576_v52 = vmax.f32 %v546_v50, %v563_v51 }
 0x203   :  { %590 = vst.msk [vmem:[%s978_s5 + $0x60] sm:$0xff] %vm577_vm1, %v576_v52 }

</bundles_post_ra>
